<compile_context>
chip_gen: v7x
topology: tpu7x:2x2x1
jax: 0.10.0
libtpu: 0.0.40
codegen_flags: <defaults>
</compile_context>

<pallas_src>
import functools

import jax
import jax.numpy as jnp
from jax import lax
from jax.experimental import pallas as pl
from jax.experimental.pallas import tpu as pltpu

LANES = 128        # vreg lane width
CHUNK_ROWS = 8     # one vreg (8 sublanes x 128 lanes) per feature per chunk


def _mlp_kernel(p_ref, x_ref, o_ref, *, in_dim, hidden_dim, out_dim, tile_rows):
    """Fused MLP on one batch tile.

    p_ref : SMEM f32[in*hid + hid + hid*out + out] packed (w1 | b1 | w2 | b2),
            weights stored row-major as [in, out].
    x_ref : VMEM f32[in_dim,  tile_rows, 128]   (batch on sublane x lane)
    o_ref : VMEM f32[out_dim, tile_rows, 128]
    """
    w1_off = 0
    b1_off = w1_off + in_dim * hidden_dim
    w2_off = b1_off + hidden_dim
    b2_off = w2_off + hidden_dim * out_dim

    # Hoist every scalar parameter read above the chunk loop (JAX does not CSE
    # repeated SMEM reads; inside the loop they'd be multiplied by trip count).
    w1 = [[p_ref[w1_off + i * hidden_dim + h] for i in range(in_dim)]
          for h in range(hidden_dim)]
    b1 = [p_ref[b1_off + h] for h in range(hidden_dim)]
    w2 = [[p_ref[w2_off + h * out_dim + o] for h in range(hidden_dim)]
          for o in range(out_dim)]
    b2 = [p_ref[b2_off + o] for o in range(out_dim)]

    half_in = max(1, in_dim // 2)
    n_chunks = tile_rows // CHUNK_ROWS

    def chunk_body(c, carry):
        r = pl.multiple_of(c * CHUNK_ROWS, CHUNK_ROWS)
        # One vreg per input feature for this chunk: the full pipeline stays in
        # registers, no whole-tile intermediates, no spill traffic on the vst slot.
        xs = [x_ref[i, pl.ds(r, CHUNK_ROWS), :] for i in range(in_dim)]

        # Two partial sums per output accumulator to break the serial add chain.
        out_parts = [[None, None] for _ in range(out_dim)]

        for h in range(hidden_dim):
            # Layer 1: scalar-broadcast FMAs on the VPU, two partial chains.
            a0 = xs[0] * w1[h][0]
            for i in range(1, half_in):
                a0 = a0 + xs[i] * w1[h][i]
            a1 = None
            for i in range(half_in, in_dim):
                t = xs[i] * w1[h][i]
                a1 = t if a1 is None else a1 + t
            pre = a0 + b1[h] if a1 is None else a0 + (a1 + b1[h])
            hv = jnp.maximum(pre, 0.0)
            # Layer 2 fused in immediately; hv is dropped right after.
            for o in range(out_dim):
                part = h & 1
                t = hv * w2[o][h]
                out_parts[o][part] = (
                    t if out_parts[o][part] is None else out_parts[o][part] + t)

        for o in range(out_dim):
            z = out_parts[o][0]
            if out_parts[o][1] is not None:
                z = z + out_parts[o][1]
            z = z + b2[o]
            # Exact sigmoid via a single EUP op: sigmoid(z) = 0.5*tanh(z/2) + 0.5.
            o_ref[o, pl.ds(r, CHUNK_ROWS), :] = (
                0.5 * jnp.tanh(0.5 * z) + 0.5).astype(o_ref.dtype)
        return carry

    lax.fori_loop(0, n_chunks, chunk_body, 0, unroll=min(4, n_chunks))


def _choose_tiling(batch, max_tile_rows, target_tiles=4):
    """Pick (tile_rows, n_tiles) so there are >= target_tiles grid steps
    (pipelining + v7x 2-TC sharding) without exceeding max_tile_rows."""
    rows = pl.cdiv(batch, LANES)                       # sublane-rows of 128 elems
    tile_rows = pl.cdiv(rows, target_tiles)
    tile_rows = min(max_tile_rows,
                    max(CHUNK_ROWS, pl.cdiv(tile_rows, CHUNK_ROWS) * CHUNK_ROWS))
    n_tiles = pl.cdiv(rows, tile_rows)
    if n_tiles > 1 and n_tiles % 2:                    # keep v7x's two TCs balanced
        n_tiles += 1
    return tile_rows, n_tiles


def simple_self_model_forward(x, w1, b1, w2, b2, *, max_tile_rows=1024):
    """x: [B, in] f32; w1: [in, hid]; b1: [hid]; w2: [hid, out]; b2: [out]."""
    B, in_dim = x.shape
    hidden_dim = w1.shape[1]
    out_dim = w2.shape[1]

    tile_rows, n_tiles = _choose_tiling(B, max_tile_rows)
    Bp = n_tiles * tile_rows * LANES

    # Lane-dense layout: batch index b -> (row b // 128, lane b % 128).
    # jnp.pad (not zeros().at[].set()) keeps the relayout one cheap op.
    # TODO(synk): for large-B pipelines, accept/produce feature-major activations
    # ([in_dim, B] in / [out_dim, B] out) so this transpose folds into the
    # neighbouring ops instead of an extra HBM round trip.
    xp = jnp.pad(x.astype(jnp.float32), ((0, Bp - B), (0, 0)))
    xt = xp.T.reshape(in_dim, Bp // LANES, LANES)

    # Pack all parameters (114 floats) into one tiny SMEM-resident array.
    params = jnp.concatenate(
        [w1.reshape(-1), b1.reshape(-1), w2.reshape(-1), b2.reshape(-1)]
    ).astype(jnp.float32)

    kernel = functools.partial(
        _mlp_kernel, in_dim=in_dim, hidden_dim=hidden_dim, out_dim=out_dim,
        tile_rows=tile_rows)

    out = pl.pallas_call(
        kernel,
        out_shape=jax.ShapeDtypeStruct((out_dim, Bp // LANES, LANES), jnp.float32),
        grid=(n_tiles,),
        in_specs=[
            pl.BlockSpec(memory_space=pltpu.MemorySpace.SMEM),               # params
            pl.BlockSpec((in_dim, tile_rows, LANES), lambda i: (0, i, 0)),   # x tile
        ],
        out_specs=pl.BlockSpec((out_dim, tile_rows, LANES), lambda i: (0, i, 0)),
        compiler_params=pltpu.CompilerParams(
            dimension_semantics=("parallel",)),  # shard batch across v7x's 2 TCs
    )(params, xt)

    # Back to [B, out_dim].
    return out.reshape(out_dim, Bp).T[:B].astype(x.dtype)


def init_params(key, input_dim=4, hidden_dim=16, output_dim=2):
    """Deterministic synthetic init (same shapes as the PyTorch module)."""
    k1, k2, k3, k4 = jax.random.split(key, 4)
    # Weights stored as [in, out] (transposed vs torch's [out, in]) for x @ W.
    w1 = jax.random.normal(k1, (input_dim, hidden_dim), jnp.float32) * 0.1
    b1 = jax.random.normal(k2, (hidden_dim,), jnp.float32) * 0.1
    w2 = jax.random.normal(k3, (hidden_dim, output_dim), jnp.float32) * 0.1
    b2 = jax.random.normal(k4, (output_dim,), jnp.float32) * 0.1
    return w1, b1, w2, b2


def reference_forward(x, w1, b1, w2, b2):
    h = jnp.maximum(x @ w1 + b1, 0.0)
    return jax.nn.sigmoid(h @ w2 + b2)


if __name__ == "__main__":
    key = jax.random.PRNGKey(0)
    kx, kp = jax.random.split(key)

    batch, input_dim, hidden_dim, output_dim = 8, 4, 16, 2
    x = jax.random.normal(kx, (batch, input_dim), jnp.float32)
    w1, b1, w2, b2 = init_params(kp, input_dim, hidden_dim, output_dim)

    fwd = jax.jit(simple_self_model_forward)
    out = jax.block_until_ready(fwd(x, w1, b1, w2, b2))

    ref = reference_forward(x, w1, b1, w2, b2)
    assert out.shape == (batch, output_dim)
    err = float(jnp.max(jnp.abs(out - ref)))
    assert jnp.allclose(out, ref, atol=1e-4, rtol=1e-4), err

    print("KERNEL_OK")
</pallas_src>

<mosaic_0001>
module attributes {stable_mosaic.version = 11 : i64} {
  func.func @_mlp_kernel(%arg0: i32, %arg1: memref<114xf32, #tpu.memory_space<smem>>, %arg2: memref<4x8x128xf32, #tpu.memory_space<vmem>>, %arg3: memref<2x8x128xf32, #tpu.memory_space<vmem>>) attributes {dimension_semantics = [#tpu.dimension_semantics<parallel>], iteration_bounds = array<i64: 1>, scalar_prefetch = 0 : i64, scratch_operands = 0 : i64, tpu.core_type = #tpu.core_type<tc>, window_params = [{transform_indices = @transform_0, window_bounds = array<i64: 114>}, {transform_indices = @transform_1, window_bounds = array<i64: 4, 8, 128>}, {transform_indices = @transform_2, window_bounds = array<i64: 2, 8, 128>}]} {
    %c0 = arith.constant 0 : index
    %0 = memref.load %arg1[%c0] : memref<114xf32, #tpu.memory_space<smem>>
    %c16 = arith.constant 16 : index
    %1 = memref.load %arg1[%c16] : memref<114xf32, #tpu.memory_space<smem>>
    %c32 = arith.constant 32 : index
    %2 = memref.load %arg1[%c32] : memref<114xf32, #tpu.memory_space<smem>>
    %c48 = arith.constant 48 : index
    %3 = memref.load %arg1[%c48] : memref<114xf32, #tpu.memory_space<smem>>
    %c1 = arith.constant 1 : index
    %4 = memref.load %arg1[%c1] : memref<114xf32, #tpu.memory_space<smem>>
    %c17 = arith.constant 17 : index
    %5 = memref.load %arg1[%c17] : memref<114xf32, #tpu.memory_space<smem>>
    %c33 = arith.constant 33 : index
    %6 = memref.load %arg1[%c33] : memref<114xf32, #tpu.memory_space<smem>>
    %c49 = arith.constant 49 : index
    %7 = memref.load %arg1[%c49] : memref<114xf32, #tpu.memory_space<smem>>
    %c2 = arith.constant 2 : index
    %8 = memref.load %arg1[%c2] : memref<114xf32, #tpu.memory_space<smem>>
    %c18 = arith.constant 18 : index
    %9 = memref.load %arg1[%c18] : memref<114xf32, #tpu.memory_space<smem>>
    %c34 = arith.constant 34 : index
    %10 = memref.load %arg1[%c34] : memref<114xf32, #tpu.memory_space<smem>>
    %c50 = arith.constant 50 : index
    %11 = memref.load %arg1[%c50] : memref<114xf32, #tpu.memory_space<smem>>
    %c3 = arith.constant 3 : index
    %12 = memref.load %arg1[%c3] : memref<114xf32, #tpu.memory_space<smem>>
    %c19 = arith.constant 19 : index
    %13 = memref.load %arg1[%c19] : memref<114xf32, #tpu.memory_space<smem>>
    %c35 = arith.constant 35 : index
    %14 = memref.load %arg1[%c35] : memref<114xf32, #tpu.memory_space<smem>>
    %c51 = arith.constant 51 : index
    %15 = memref.load %arg1[%c51] : memref<114xf32, #tpu.memory_space<smem>>
    %c4 = arith.constant 4 : index
    %16 = memref.load %arg1[%c4] : memref<114xf32, #tpu.memory_space<smem>>
    %c20 = arith.constant 20 : index
    %17 = memref.load %arg1[%c20] : memref<114xf32, #tpu.memory_space<smem>>
    %c36 = arith.constant 36 : index
    %18 = memref.load %arg1[%c36] : memref<114xf32, #tpu.memory_space<smem>>
    %c52 = arith.constant 52 : index
    %19 = memref.load %arg1[%c52] : memref<114xf32, #tpu.memory_space<smem>>
    %c5 = arith.constant 5 : index
    %20 = memref.load %arg1[%c5] : memref<114xf32, #tpu.memory_space<smem>>
    %c21 = arith.constant 21 : index
    %21 = memref.load %arg1[%c21] : memref<114xf32, #tpu.memory_space<smem>>
    %c37 = arith.constant 37 : index
    %22 = memref.load %arg1[%c37] : memref<114xf32, #tpu.memory_space<smem>>
    %c53 = arith.constant 53 : index
    %23 = memref.load %arg1[%c53] : memref<114xf32, #tpu.memory_space<smem>>
    %c6 = arith.constant 6 : index
    %24 = memref.load %arg1[%c6] : memref<114xf32, #tpu.memory_space<smem>>
    %c22 = arith.constant 22 : index
    %25 = memref.load %arg1[%c22] : memref<114xf32, #tpu.memory_space<smem>>
    %c38 = arith.constant 38 : index
    %26 = memref.load %arg1[%c38] : memref<114xf32, #tpu.memory_space<smem>>
    %c54 = arith.constant 54 : index
    %27 = memref.load %arg1[%c54] : memref<114xf32, #tpu.memory_space<smem>>
    %c7 = arith.constant 7 : index
    %28 = memref.load %arg1[%c7] : memref<114xf32, #tpu.memory_space<smem>>
    %c23 = arith.constant 23 : index
    %29 = memref.load %arg1[%c23] : memref<114xf32, #tpu.memory_space<smem>>
    %c39 = arith.constant 39 : index
    %30 = memref.load %arg1[%c39] : memref<114xf32, #tpu.memory_space<smem>>
    %c55 = arith.constant 55 : index
    %31 = memref.load %arg1[%c55] : memref<114xf32, #tpu.memory_space<smem>>
    %c8 = arith.constant 8 : index
    %32 = memref.load %arg1[%c8] : memref<114xf32, #tpu.memory_space<smem>>
    %c24 = arith.constant 24 : index
    %33 = memref.load %arg1[%c24] : memref<114xf32, #tpu.memory_space<smem>>
    %c40 = arith.constant 40 : index
    %34 = memref.load %arg1[%c40] : memref<114xf32, #tpu.memory_space<smem>>
    %c56 = arith.constant 56 : index
    %35 = memref.load %arg1[%c56] : memref<114xf32, #tpu.memory_space<smem>>
    %c9 = arith.constant 9 : index
    %36 = memref.load %arg1[%c9] : memref<114xf32, #tpu.memory_space<smem>>
    %c25 = arith.constant 25 : index
    %37 = memref.load %arg1[%c25] : memref<114xf32, #tpu.memory_space<smem>>
    %c41 = arith.constant 41 : index
    %38 = memref.load %arg1[%c41] : memref<114xf32, #tpu.memory_space<smem>>
    %c57 = arith.constant 57 : index
    %39 = memref.load %arg1[%c57] : memref<114xf32, #tpu.memory_space<smem>>
    %c10 = arith.constant 10 : index
    %40 = memref.load %arg1[%c10] : memref<114xf32, #tpu.memory_space<smem>>
    %c26 = arith.constant 26 : index
    %41 = memref.load %arg1[%c26] : memref<114xf32, #tpu.memory_space<smem>>
    %c42 = arith.constant 42 : index
    %42 = memref.load %arg1[%c42] : memref<114xf32, #tpu.memory_space<smem>>
    %c58 = arith.constant 58 : index
    %43 = memref.load %arg1[%c58] : memref<114xf32, #tpu.memory_space<smem>>
    %c11 = arith.constant 11 : index
    %44 = memref.load %arg1[%c11] : memref<114xf32, #tpu.memory_space<smem>>
    %c27 = arith.constant 27 : index
    %45 = memref.load %arg1[%c27] : memref<114xf32, #tpu.memory_space<smem>>
    %c43 = arith.constant 43 : index
    %46 = memref.load %arg1[%c43] : memref<114xf32, #tpu.memory_space<smem>>
    %c59 = arith.constant 59 : index
    %47 = memref.load %arg1[%c59] : memref<114xf32, #tpu.memory_space<smem>>
    %c12 = arith.constant 12 : index
    %48 = memref.load %arg1[%c12] : memref<114xf32, #tpu.memory_space<smem>>
    %c28 = arith.constant 28 : index
    %49 = memref.load %arg1[%c28] : memref<114xf32, #tpu.memory_space<smem>>
    %c44 = arith.constant 44 : index
    %50 = memref.load %arg1[%c44] : memref<114xf32, #tpu.memory_space<smem>>
    %c60 = arith.constant 60 : index
    %51 = memref.load %arg1[%c60] : memref<114xf32, #tpu.memory_space<smem>>
    %c13 = arith.constant 13 : index
    %52 = memref.load %arg1[%c13] : memref<114xf32, #tpu.memory_space<smem>>
    %c29 = arith.constant 29 : index
    %53 = memref.load %arg1[%c29] : memref<114xf32, #tpu.memory_space<smem>>
    %c45 = arith.constant 45 : index
    %54 = memref.load %arg1[%c45] : memref<114xf32, #tpu.memory_space<smem>>
    %c61 = arith.constant 61 : index
    %55 = memref.load %arg1[%c61] : memref<114xf32, #tpu.memory_space<smem>>
    %c14 = arith.constant 14 : index
    %56 = memref.load %arg1[%c14] : memref<114xf32, #tpu.memory_space<smem>>
    %c30 = arith.constant 30 : index
    %57 = memref.load %arg1[%c30] : memref<114xf32, #tpu.memory_space<smem>>
    %c46 = arith.constant 46 : index
    %58 = memref.load %arg1[%c46] : memref<114xf32, #tpu.memory_space<smem>>
    %c62 = arith.constant 62 : index
    %59 = memref.load %arg1[%c62] : memref<114xf32, #tpu.memory_space<smem>>
    %c15 = arith.constant 15 : index
    %60 = memref.load %arg1[%c15] : memref<114xf32, #tpu.memory_space<smem>>
    %c31 = arith.constant 31 : index
    %61 = memref.load %arg1[%c31] : memref<114xf32, #tpu.memory_space<smem>>
    %c47 = arith.constant 47 : index
    %62 = memref.load %arg1[%c47] : memref<114xf32, #tpu.memory_space<smem>>
    %c63 = arith.constant 63 : index
    %63 = memref.load %arg1[%c63] : memref<114xf32, #tpu.memory_space<smem>>
    %c64 = arith.constant 64 : index
    %64 = memref.load %arg1[%c64] : memref<114xf32, #tpu.memory_space<smem>>
    %c65 = arith.constant 65 : index
    %65 = memref.load %arg1[%c65] : memref<114xf32, #tpu.memory_space<smem>>
    %c66 = arith.constant 66 : index
    %66 = memref.load %arg1[%c66] : memref<114xf32, #tpu.memory_space<smem>>
    %c67 = arith.constant 67 : index
    %67 = memref.load %arg1[%c67] : memref<114xf32, #tpu.memory_space<smem>>
    %c68 = arith.constant 68 : index
    %68 = memref.load %arg1[%c68] : memref<114xf32, #tpu.memory_space<smem>>
    %c69 = arith.constant 69 : index
    %69 = memref.load %arg1[%c69] : memref<114xf32, #tpu.memory_space<smem>>
    %c70 = arith.constant 70 : index
    %70 = memref.load %arg1[%c70] : memref<114xf32, #tpu.memory_space<smem>>
    %c71 = arith.constant 71 : index
    %71 = memref.load %arg1[%c71] : memref<114xf32, #tpu.memory_space<smem>>
    %c72 = arith.constant 72 : index
    %72 = memref.load %arg1[%c72] : memref<114xf32, #tpu.memory_space<smem>>
    %c73 = arith.constant 73 : index
    %73 = memref.load %arg1[%c73] : memref<114xf32, #tpu.memory_space<smem>>
    %c74 = arith.constant 74 : index
    %74 = memref.load %arg1[%c74] : memref<114xf32, #tpu.memory_space<smem>>
    %c75 = arith.constant 75 : index
    %75 = memref.load %arg1[%c75] : memref<114xf32, #tpu.memory_space<smem>>
    %c76 = arith.constant 76 : index
    %76 = memref.load %arg1[%c76] : memref<114xf32, #tpu.memory_space<smem>>
    %c77 = arith.constant 77 : index
    %77 = memref.load %arg1[%c77] : memref<114xf32, #tpu.memory_space<smem>>
    %c78 = arith.constant 78 : index
    %78 = memref.load %arg1[%c78] : memref<114xf32, #tpu.memory_space<smem>>
    %c79 = arith.constant 79 : index
    %79 = memref.load %arg1[%c79] : memref<114xf32, #tpu.memory_space<smem>>
    %c80 = arith.constant 80 : index
    %80 = memref.load %arg1[%c80] : memref<114xf32, #tpu.memory_space<smem>>
    %c82 = arith.constant 82 : index
    %81 = memref.load %arg1[%c82] : memref<114xf32, #tpu.memory_space<smem>>
    %c84 = arith.constant 84 : index
    %82 = memref.load %arg1[%c84] : memref<114xf32, #tpu.memory_space<smem>>
    %c86 = arith.constant 86 : index
    %83 = memref.load %arg1[%c86] : memref<114xf32, #tpu.memory_space<smem>>
    %c88 = arith.constant 88 : index
    %84 = memref.load %arg1[%c88] : memref<114xf32, #tpu.memory_space<smem>>
    %c90 = arith.constant 90 : index
    %85 = memref.load %arg1[%c90] : memref<114xf32, #tpu.memory_space<smem>>
    %c92 = arith.constant 92 : index
    %86 = memref.load %arg1[%c92] : memref<114xf32, #tpu.memory_space<smem>>
    %c94 = arith.constant 94 : index
    %87 = memref.load %arg1[%c94] : memref<114xf32, #tpu.memory_space<smem>>
    %c96 = arith.constant 96 : index
    %88 = memref.load %arg1[%c96] : memref<114xf32, #tpu.memory_space<smem>>
    %c98 = arith.constant 98 : index
    %89 = memref.load %arg1[%c98] : memref<114xf32, #tpu.memory_space<smem>>
    %c100 = arith.constant 100 : index
    %90 = memref.load %arg1[%c100] : memref<114xf32, #tpu.memory_space<smem>>
    %c102 = arith.constant 102 : index
    %91 = memref.load %arg1[%c102] : memref<114xf32, #tpu.memory_space<smem>>
    %c104 = arith.constant 104 : index
    %92 = memref.load %arg1[%c104] : memref<114xf32, #tpu.memory_space<smem>>
    %c106 = arith.constant 106 : index
    %93 = memref.load %arg1[%c106] : memref<114xf32, #tpu.memory_space<smem>>
    %c108 = arith.constant 108 : index
    %94 = memref.load %arg1[%c108] : memref<114xf32, #tpu.memory_space<smem>>
    %c110 = arith.constant 110 : index
    %95 = memref.load %arg1[%c110] : memref<114xf32, #tpu.memory_space<smem>>
    %c81 = arith.constant 81 : index
    %96 = memref.load %arg1[%c81] : memref<114xf32, #tpu.memory_space<smem>>
    %c83 = arith.constant 83 : index
    %97 = memref.load %arg1[%c83] : memref<114xf32, #tpu.memory_space<smem>>
    %c85 = arith.constant 85 : index
    %98 = memref.load %arg1[%c85] : memref<114xf32, #tpu.memory_space<smem>>
    %c87 = arith.constant 87 : index
    %99 = memref.load %arg1[%c87] : memref<114xf32, #tpu.memory_space<smem>>
    %c89 = arith.constant 89 : index
    %100 = memref.load %arg1[%c89] : memref<114xf32, #tpu.memory_space<smem>>
    %c91 = arith.constant 91 : index
    %101 = memref.load %arg1[%c91] : memref<114xf32, #tpu.memory_space<smem>>
    %c93 = arith.constant 93 : index
    %102 = memref.load %arg1[%c93] : memref<114xf32, #tpu.memory_space<smem>>
    %c95 = arith.constant 95 : index
    %103 = memref.load %arg1[%c95] : memref<114xf32, #tpu.memory_space<smem>>
    %c97 = arith.constant 97 : index
    %104 = memref.load %arg1[%c97] : memref<114xf32, #tpu.memory_space<smem>>
    %c99 = arith.constant 99 : index
    %105 = memref.load %arg1[%c99] : memref<114xf32, #tpu.memory_space<smem>>
    %c101 = arith.constant 101 : index
    %106 = memref.load %arg1[%c101] : memref<114xf32, #tpu.memory_space<smem>>
    %c103 = arith.constant 103 : index
    %107 = memref.load %arg1[%c103] : memref<114xf32, #tpu.memory_space<smem>>
    %c105 = arith.constant 105 : index
    %108 = memref.load %arg1[%c105] : memref<114xf32, #tpu.memory_space<smem>>
    %c107 = arith.constant 107 : index
    %109 = memref.load %arg1[%c107] : memref<114xf32, #tpu.memory_space<smem>>
    %c109 = arith.constant 109 : index
    %110 = memref.load %arg1[%c109] : memref<114xf32, #tpu.memory_space<smem>>
    %c111 = arith.constant 111 : index
    %111 = memref.load %arg1[%c111] : memref<114xf32, #tpu.memory_space<smem>>
    %c112 = arith.constant 112 : index
    %112 = memref.load %arg1[%c112] : memref<114xf32, #tpu.memory_space<smem>>
    %c113 = arith.constant 113 : index
    %113 = memref.load %arg1[%c113] : memref<114xf32, #tpu.memory_space<smem>>
    %c0_i32 = arith.constant 0 : i32
    %c8_i32 = arith.constant 8 : i32
    %114 = arith.muli %c0_i32, %c8_i32 : i32
    %115 = tpu.assume_multiple %114, 8 : i32
    %c0_0 = arith.constant 0 : index
    %116 = arith.index_cast %115 : i32 to index
    %c0_1 = arith.constant 0 : index
    %117 = vector.load %arg2[%c0_0, %116, %c0_1] : memref<4x8x128xf32, #tpu.memory_space<vmem>>, vector<1x8x128xf32>
    %118 = vector.shape_cast %117 : vector<1x8x128xf32> to vector<8x128xf32>
    %c1_2 = arith.constant 1 : index
    %119 = arith.index_cast %115 : i32 to index
    %c0_3 = arith.constant 0 : index
    %120 = vector.load %arg2[%c1_2, %119, %c0_3] : memref<4x8x128xf32, #tpu.memory_space<vmem>>, vector<1x8x128xf32>
    %121 = vector.shape_cast %120 : vector<1x8x128xf32> to vector<8x128xf32>
    %c2_4 = arith.constant 2 : index
    %122 = arith.index_cast %115 : i32 to index
    %c0_5 = arith.constant 0 : index
    %123 = vector.load %arg2[%c2_4, %122, %c0_5] : memref<4x8x128xf32, #tpu.memory_space<vmem>>, vector<1x8x128xf32>
    %124 = vector.shape_cast %123 : vector<1x8x128xf32> to vector<8x128xf32>
    %c3_6 = arith.constant 3 : index
    %125 = arith.index_cast %115 : i32 to index
    %c0_7 = arith.constant 0 : index
    %126 = vector.load %arg2[%c3_6, %125, %c0_7] : memref<4x8x128xf32, #tpu.memory_space<vmem>>, vector<1x8x128xf32>
    %127 = vector.shape_cast %126 : vector<1x8x128xf32> to vector<8x128xf32>
    %128 = vector.broadcast %0 : f32 to vector<8x128xf32>
    %129 = arith.mulf %118, %128 : vector<8x128xf32>
    %130 = vector.broadcast %1 : f32 to vector<8x128xf32>
    %131 = arith.mulf %121, %130 : vector<8x128xf32>
    %132 = arith.addf %129, %131 : vector<8x128xf32>
    %133 = vector.broadcast %2 : f32 to vector<8x128xf32>
    %134 = arith.mulf %124, %133 : vector<8x128xf32>
    %135 = vector.broadcast %3 : f32 to vector<8x128xf32>
    %136 = arith.mulf %127, %135 : vector<8x128xf32>
    %137 = arith.addf %134, %136 : vector<8x128xf32>
    %138 = vector.broadcast %64 : f32 to vector<8x128xf32>
    %139 = arith.addf %137, %138 : vector<8x128xf32>
    %140 = arith.addf %132, %139 : vector<8x128xf32>
    %cst = arith.constant 0.000000e+00 : f32
    %141 = vector.broadcast %cst : f32 to vector<8x128xf32>
    %142 = arith.maximumf %140, %141 : vector<8x128xf32>
    %143 = vector.broadcast %80 : f32 to vector<8x128xf32>
    %144 = arith.mulf %142, %143 : vector<8x128xf32>
    %145 = vector.broadcast %96 : f32 to vector<8x128xf32>
    %146 = arith.mulf %142, %145 : vector<8x128xf32>
    %147 = vector.broadcast %4 : f32 to vector<8x128xf32>
    %148 = arith.mulf %118, %147 : vector<8x128xf32>
    %149 = vector.broadcast %5 : f32 to vector<8x128xf32>
    %150 = arith.mulf %121, %149 : vector<8x128xf32>
    %151 = arith.addf %148, %150 : vector<8x128xf32>
    %152 = vector.broadcast %6 : f32 to vector<8x128xf32>
    %153 = arith.mulf %124, %152 : vector<8x128xf32>
    %154 = vector.broadcast %7 : f32 to vector<8x128xf32>
    %155 = arith.mulf %127, %154 : vector<8x128xf32>
    %156 = arith.addf %153, %155 : vector<8x128xf32>
    %157 = vector.broadcast %65 : f32 to vector<8x128xf32>
    %158 = arith.addf %156, %157 : vector<8x128xf32>
    %159 = arith.addf %151, %158 : vector<8x128xf32>
    %cst_8 = arith.constant 0.000000e+00 : f32
    %160 = vector.broadcast %cst_8 : f32 to vector<8x128xf32>
    %161 = arith.maximumf %159, %160 : vector<8x128xf32>
    %162 = vector.broadcast %81 : f32 to vector<8x128xf32>
    %163 = arith.mulf %161, %162 : vector<8x128xf32>
    %164 = vector.broadcast %97 : f32 to vector<8x128xf32>
    %165 = arith.mulf %161, %164 : vector<8x128xf32>
    %166 = vector.broadcast %8 : f32 to vector<8x128xf32>
    %167 = arith.mulf %118, %166 : vector<8x128xf32>
    %168 = vector.broadcast %9 : f32 to vector<8x128xf32>
    %169 = arith.mulf %121, %168 : vector<8x128xf32>
    %170 = arith.addf %167, %169 : vector<8x128xf32>
    %171 = vector.broadcast %10 : f32 to vector<8x128xf32>
    %172 = arith.mulf %124, %171 : vector<8x128xf32>
    %173 = vector.broadcast %11 : f32 to vector<8x128xf32>
    %174 = arith.mulf %127, %173 : vector<8x128xf32>
    %175 = arith.addf %172, %174 : vector<8x128xf32>
    %176 = vector.broadcast %66 : f32 to vector<8x128xf32>
    %177 = arith.addf %175, %176 : vector<8x128xf32>
    %178 = arith.addf %170, %177 : vector<8x128xf32>
    %cst_9 = arith.constant 0.000000e+00 : f32
    %179 = vector.broadcast %cst_9 : f32 to vector<8x128xf32>
    %180 = arith.maximumf %178, %179 : vector<8x128xf32>
    %181 = vector.broadcast %82 : f32 to vector<8x128xf32>
    %182 = arith.mulf %180, %181 : vector<8x128xf32>
    %183 = arith.addf %144, %182 : vector<8x128xf32>
    %184 = vector.broadcast %98 : f32 to vector<8x128xf32>
    %185 = arith.mulf %180, %184 : vector<8x128xf32>
    %186 = arith.addf %146, %185 : vector<8x128xf32>
    %187 = vector.broadcast %12 : f32 to vector<8x128xf32>
    %188 = arith.mulf %118, %187 : vector<8x128xf32>
    %189 = vector.broadcast %13 : f32 to vector<8x128xf32>
    %190 = arith.mulf %121, %189 : vector<8x128xf32>
    %191 = arith.addf %188, %190 : vector<8x128xf32>
    %192 = vector.broadcast %14 : f32 to vector<8x128xf32>
    %193 = arith.mulf %124, %192 : vector<8x128xf32>
    %194 = vector.broadcast %15 : f32 to vector<8x128xf32>
    %195 = arith.mulf %127, %194 : vector<8x128xf32>
    %196 = arith.addf %193, %195 : vector<8x128xf32>
    %197 = vector.broadcast %67 : f32 to vector<8x128xf32>
    %198 = arith.addf %196, %197 : vector<8x128xf32>
    %199 = arith.addf %191, %198 : vector<8x128xf32>
    %cst_10 = arith.constant 0.000000e+00 : f32
    %200 = vector.broadcast %cst_10 : f32 to vector<8x128xf32>
    %201 = arith.maximumf %199, %200 : vector<8x128xf32>
    %202 = vector.broadcast %83 : f32 to vector<8x128xf32>
    %203 = arith.mulf %201, %202 : vector<8x128xf32>
    %204 = arith.addf %163, %203 : vector<8x128xf32>
    %205 = vector.broadcast %99 : f32 to vector<8x128xf32>
    %206 = arith.mulf %201, %205 : vector<8x128xf32>
    %207 = arith.addf %165, %206 : vector<8x128xf32>
    %208 = vector.broadcast %16 : f32 to vector<8x128xf32>
    %209 = arith.mulf %118, %208 : vector<8x128xf32>
    %210 = vector.broadcast %17 : f32 to vector<8x128xf32>
    %211 = arith.mulf %121, %210 : vector<8x128xf32>
    %212 = arith.addf %209, %211 : vector<8x128xf32>
    %213 = vector.broadcast %18 : f32 to vector<8x128xf32>
    %214 = arith.mulf %124, %213 : vector<8x128xf32>
    %215 = vector.broadcast %19 : f32 to vector<8x128xf32>
    %216 = arith.mulf %127, %215 : vector<8x128xf32>
    %217 = arith.addf %214, %216 : vector<8x128xf32>
    %218 = vector.broadcast %68 : f32 to vector<8x128xf32>
    %219 = arith.addf %217, %218 : vector<8x128xf32>
    %220 = arith.addf %212, %219 : vector<8x128xf32>
    %cst_11 = arith.constant 0.000000e+00 : f32
    %221 = vector.broadcast %cst_11 : f32 to vector<8x128xf32>
    %222 = arith.maximumf %220, %221 : vector<8x128xf32>
    %223 = vector.broadcast %84 : f32 to vector<8x128xf32>
    %224 = arith.mulf %222, %223 : vector<8x128xf32>
    %225 = arith.addf %183, %224 : vector<8x128xf32>
    %226 = vector.broadcast %100 : f32 to vector<8x128xf32>
    %227 = arith.mulf %222, %226 : vector<8x128xf32>
    %228 = arith.addf %186, %227 : vector<8x128xf32>
    %229 = vector.broadcast %20 : f32 to vector<8x128xf32>
    %230 = arith.mulf %118, %229 : vector<8x128xf32>
    %231 = vector.broadcast %21 : f32 to vector<8x128xf32>
    %232 = arith.mulf %121, %231 : vector<8x128xf32>
    %233 = arith.addf %230, %232 : vector<8x128xf32>
    %234 = vector.broadcast %22 : f32 to vector<8x128xf32>
    %235 = arith.mulf %124, %234 : vector<8x128xf32>
    %236 = vector.broadcast %23 : f32 to vector<8x128xf32>
    %237 = arith.mulf %127, %236 : vector<8x128xf32>
    %238 = arith.addf %235, %237 : vector<8x128xf32>
    %239 = vector.broadcast %69 : f32 to vector<8x128xf32>
    %240 = arith.addf %238, %239 : vector<8x128xf32>
    %241 = arith.addf %233, %240 : vector<8x128xf32>
    %cst_12 = arith.constant 0.000000e+00 : f32
    %242 = vector.broadcast %cst_12 : f32 to vector<8x128xf32>
    %243 = arith.maximumf %241, %242 : vector<8x128xf32>
    %244 = vector.broadcast %85 : f32 to vector<8x128xf32>
    %245 = arith.mulf %243, %244 : vector<8x128xf32>
    %246 = arith.addf %204, %245 : vector<8x128xf32>
    %247 = vector.broadcast %101 : f32 to vector<8x128xf32>
    %248 = arith.mulf %243, %247 : vector<8x128xf32>
    %249 = arith.addf %207, %248 : vector<8x128xf32>
    %250 = vector.broadcast %24 : f32 to vector<8x128xf32>
    %251 = arith.mulf %118, %250 : vector<8x128xf32>
    %252 = vector.broadcast %25 : f32 to vector<8x128xf32>
    %253 = arith.mulf %121, %252 : vector<8x128xf32>
    %254 = arith.addf %251, %253 : vector<8x128xf32>
    %255 = vector.broadcast %26 : f32 to vector<8x128xf32>
    %256 = arith.mulf %124, %255 : vector<8x128xf32>
    %257 = vector.broadcast %27 : f32 to vector<8x128xf32>
    %258 = arith.mulf %127, %257 : vector<8x128xf32>
    %259 = arith.addf %256, %258 : vector<8x128xf32>
    %260 = vector.broadcast %70 : f32 to vector<8x128xf32>
    %261 = arith.addf %259, %260 : vector<8x128xf32>
    %262 = arith.addf %254, %261 : vector<8x128xf32>
    %cst_13 = arith.constant 0.000000e+00 : f32
    %263 = vector.broadcast %cst_13 : f32 to vector<8x128xf32>
    %264 = arith.maximumf %262, %263 : vector<8x128xf32>
    %265 = vector.broadcast %86 : f32 to vector<8x128xf32>
    %266 = arith.mulf %264, %265 : vector<8x128xf32>
    %267 = arith.addf %225, %266 : vector<8x128xf32>
    %268 = vector.broadcast %102 : f32 to vector<8x128xf32>
    %269 = arith.mulf %264, %268 : vector<8x128xf32>
    %270 = arith.addf %228, %269 : vector<8x128xf32>
    %271 = vector.broadcast %28 : f32 to vector<8x128xf32>
    %272 = arith.mulf %118, %271 : vector<8x128xf32>
    %273 = vector.broadcast %29 : f32 to vector<8x128xf32>
    %274 = arith.mulf %121, %273 : vector<8x128xf32>
    %275 = arith.addf %272, %274 : vector<8x128xf32>
    %276 = vector.broadcast %30 : f32 to vector<8x128xf32>
    %277 = arith.mulf %124, %276 : vector<8x128xf32>
    %278 = vector.broadcast %31 : f32 to vector<8x128xf32>
    %279 = arith.mulf %127, %278 : vector<8x128xf32>
    %280 = arith.addf %277, %279 : vector<8x128xf32>
    %281 = vector.broadcast %71 : f32 to vector<8x128xf32>
    %282 = arith.addf %280, %281 : vector<8x128xf32>
    %283 = arith.addf %275, %282 : vector<8x128xf32>
    %cst_14 = arith.constant 0.000000e+00 : f32
    %284 = vector.broadcast %cst_14 : f32 to vector<8x128xf32>
    %285 = arith.maximumf %283, %284 : vector<8x128xf32>
    %286 = vector.broadcast %87 : f32 to vector<8x128xf32>
    %287 = arith.mulf %285, %286 : vector<8x128xf32>
    %288 = arith.addf %246, %287 : vector<8x128xf32>
    %289 = vector.broadcast %103 : f32 to vector<8x128xf32>
    %290 = arith.mulf %285, %289 : vector<8x128xf32>
    %291 = arith.addf %249, %290 : vector<8x128xf32>
    %292 = vector.broadcast %32 : f32 to vector<8x128xf32>
    %293 = arith.mulf %118, %292 : vector<8x128xf32>
    %294 = vector.broadcast %33 : f32 to vector<8x128xf32>
    %295 = arith.mulf %121, %294 : vector<8x128xf32>
    %296 = arith.addf %293, %295 : vector<8x128xf32>
    %297 = vector.broadcast %34 : f32 to vector<8x128xf32>
    %298 = arith.mulf %124, %297 : vector<8x128xf32>
    %299 = vector.broadcast %35 : f32 to vector<8x128xf32>
    %300 = arith.mulf %127, %299 : vector<8x128xf32>
    %301 = arith.addf %298, %300 : vector<8x128xf32>
    %302 = vector.broadcast %72 : f32 to vector<8x128xf32>
    %303 = arith.addf %301, %302 : vector<8x128xf32>
    %304 = arith.addf %296, %303 : vector<8x128xf32>
    %cst_15 = arith.constant 0.000000e+00 : f32
    %305 = vector.broadcast %cst_15 : f32 to vector<8x128xf32>
    %306 = arith.maximumf %304, %305 : vector<8x128xf32>
    %307 = vector.broadcast %88 : f32 to vector<8x128xf32>
    %308 = arith.mulf %306, %307 : vector<8x128xf32>
    %309 = arith.addf %267, %308 : vector<8x128xf32>
    %310 = vector.broadcast %104 : f32 to vector<8x128xf32>
    %311 = arith.mulf %306, %310 : vector<8x128xf32>
    %312 = arith.addf %270, %311 : vector<8x128xf32>
    %313 = vector.broadcast %36 : f32 to vector<8x128xf32>
    %314 = arith.mulf %118, %313 : vector<8x128xf32>
    %315 = vector.broadcast %37 : f32 to vector<8x128xf32>
    %316 = arith.mulf %121, %315 : vector<8x128xf32>
    %317 = arith.addf %314, %316 : vector<8x128xf32>
    %318 = vector.broadcast %38 : f32 to vector<8x128xf32>
    %319 = arith.mulf %124, %318 : vector<8x128xf32>
    %320 = vector.broadcast %39 : f32 to vector<8x128xf32>
    %321 = arith.mulf %127, %320 : vector<8x128xf32>
    %322 = arith.addf %319, %321 : vector<8x128xf32>
    %323 = vector.broadcast %73 : f32 to vector<8x128xf32>
    %324 = arith.addf %322, %323 : vector<8x128xf32>
    %325 = arith.addf %317, %324 : vector<8x128xf32>
    %cst_16 = arith.constant 0.000000e+00 : f32
    %326 = vector.broadcast %cst_16 : f32 to vector<8x128xf32>
    %327 = arith.maximumf %325, %326 : vector<8x128xf32>
    %328 = vector.broadcast %89 : f32 to vector<8x128xf32>
    %329 = arith.mulf %327, %328 : vector<8x128xf32>
    %330 = arith.addf %288, %329 : vector<8x128xf32>
    %331 = vector.broadcast %105 : f32 to vector<8x128xf32>
    %332 = arith.mulf %327, %331 : vector<8x128xf32>
    %333 = arith.addf %291, %332 : vector<8x128xf32>
    %334 = vector.broadcast %40 : f32 to vector<8x128xf32>
    %335 = arith.mulf %118, %334 : vector<8x128xf32>
    %336 = vector.broadcast %41 : f32 to vector<8x128xf32>
    %337 = arith.mulf %121, %336 : vector<8x128xf32>
    %338 = arith.addf %335, %337 : vector<8x128xf32>
    %339 = vector.broadcast %42 : f32 to vector<8x128xf32>
    %340 = arith.mulf %124, %339 : vector<8x128xf32>
    %341 = vector.broadcast %43 : f32 to vector<8x128xf32>
    %342 = arith.mulf %127, %341 : vector<8x128xf32>
    %343 = arith.addf %340, %342 : vector<8x128xf32>
    %344 = vector.broadcast %74 : f32 to vector<8x128xf32>
    %345 = arith.addf %343, %344 : vector<8x128xf32>
    %346 = arith.addf %338, %345 : vector<8x128xf32>
    %cst_17 = arith.constant 0.000000e+00 : f32
    %347 = vector.broadcast %cst_17 : f32 to vector<8x128xf32>
    %348 = arith.maximumf %346, %347 : vector<8x128xf32>
    %349 = vector.broadcast %90 : f32 to vector<8x128xf32>
    %350 = arith.mulf %348, %349 : vector<8x128xf32>
    %351 = arith.addf %309, %350 : vector<8x128xf32>
    %352 = vector.broadcast %106 : f32 to vector<8x128xf32>
    %353 = arith.mulf %348, %352 : vector<8x128xf32>
    %354 = arith.addf %312, %353 : vector<8x128xf32>
    %355 = vector.broadcast %44 : f32 to vector<8x128xf32>
    %356 = arith.mulf %118, %355 : vector<8x128xf32>
    %357 = vector.broadcast %45 : f32 to vector<8x128xf32>
    %358 = arith.mulf %121, %357 : vector<8x128xf32>
    %359 = arith.addf %356, %358 : vector<8x128xf32>
    %360 = vector.broadcast %46 : f32 to vector<8x128xf32>
    %361 = arith.mulf %124, %360 : vector<8x128xf32>
    %362 = vector.broadcast %47 : f32 to vector<8x128xf32>
    %363 = arith.mulf %127, %362 : vector<8x128xf32>
    %364 = arith.addf %361, %363 : vector<8x128xf32>
    %365 = vector.broadcast %75 : f32 to vector<8x128xf32>
    %366 = arith.addf %364, %365 : vector<8x128xf32>
    %367 = arith.addf %359, %366 : vector<8x128xf32>
    %cst_18 = arith.constant 0.000000e+00 : f32
    %368 = vector.broadcast %cst_18 : f32 to vector<8x128xf32>
    %369 = arith.maximumf %367, %368 : vector<8x128xf32>
    %370 = vector.broadcast %91 : f32 to vector<8x128xf32>
    %371 = arith.mulf %369, %370 : vector<8x128xf32>
    %372 = arith.addf %330, %371 : vector<8x128xf32>
    %373 = vector.broadcast %107 : f32 to vector<8x128xf32>
    %374 = arith.mulf %369, %373 : vector<8x128xf32>
    %375 = arith.addf %333, %374 : vector<8x128xf32>
    %376 = vector.broadcast %48 : f32 to vector<8x128xf32>
    %377 = arith.mulf %118, %376 : vector<8x128xf32>
    %378 = vector.broadcast %49 : f32 to vector<8x128xf32>
    %379 = arith.mulf %121, %378 : vector<8x128xf32>
    %380 = arith.addf %377, %379 : vector<8x128xf32>
    %381 = vector.broadcast %50 : f32 to vector<8x128xf32>
    %382 = arith.mulf %124, %381 : vector<8x128xf32>
    %383 = vector.broadcast %51 : f32 to vector<8x128xf32>
    %384 = arith.mulf %127, %383 : vector<8x128xf32>
    %385 = arith.addf %382, %384 : vector<8x128xf32>
    %386 = vector.broadcast %76 : f32 to vector<8x128xf32>
    %387 = arith.addf %385, %386 : vector<8x128xf32>
    %388 = arith.addf %380, %387 : vector<8x128xf32>
    %cst_19 = arith.constant 0.000000e+00 : f32
    %389 = vector.broadcast %cst_19 : f32 to vector<8x128xf32>
    %390 = arith.maximumf %388, %389 : vector<8x128xf32>
    %391 = vector.broadcast %92 : f32 to vector<8x128xf32>
    %392 = arith.mulf %390, %391 : vector<8x128xf32>
    %393 = arith.addf %351, %392 : vector<8x128xf32>
    %394 = vector.broadcast %108 : f32 to vector<8x128xf32>
    %395 = arith.mulf %390, %394 : vector<8x128xf32>
    %396 = arith.addf %354, %395 : vector<8x128xf32>
    %397 = vector.broadcast %52 : f32 to vector<8x128xf32>
    %398 = arith.mulf %118, %397 : vector<8x128xf32>
    %399 = vector.broadcast %53 : f32 to vector<8x128xf32>
    %400 = arith.mulf %121, %399 : vector<8x128xf32>
    %401 = arith.addf %398, %400 : vector<8x128xf32>
    %402 = vector.broadcast %54 : f32 to vector<8x128xf32>
    %403 = arith.mulf %124, %402 : vector<8x128xf32>
    %404 = vector.broadcast %55 : f32 to vector<8x128xf32>
    %405 = arith.mulf %127, %404 : vector<8x128xf32>
    %406 = arith.addf %403, %405 : vector<8x128xf32>
    %407 = vector.broadcast %77 : f32 to vector<8x128xf32>
    %408 = arith.addf %406, %407 : vector<8x128xf32>
    %409 = arith.addf %401, %408 : vector<8x128xf32>
    %cst_20 = arith.constant 0.000000e+00 : f32
    %410 = vector.broadcast %cst_20 : f32 to vector<8x128xf32>
    %411 = arith.maximumf %409, %410 : vector<8x128xf32>
    %412 = vector.broadcast %93 : f32 to vector<8x128xf32>
    %413 = arith.mulf %411, %412 : vector<8x128xf32>
    %414 = arith.addf %372, %413 : vector<8x128xf32>
    %415 = vector.broadcast %109 : f32 to vector<8x128xf32>
    %416 = arith.mulf %411, %415 : vector<8x128xf32>
    %417 = arith.addf %375, %416 : vector<8x128xf32>
    %418 = vector.broadcast %56 : f32 to vector<8x128xf32>
    %419 = arith.mulf %118, %418 : vector<8x128xf32>
    %420 = vector.broadcast %57 : f32 to vector<8x128xf32>
    %421 = arith.mulf %121, %420 : vector<8x128xf32>
    %422 = arith.addf %419, %421 : vector<8x128xf32>
    %423 = vector.broadcast %58 : f32 to vector<8x128xf32>
    %424 = arith.mulf %124, %423 : vector<8x128xf32>
    %425 = vector.broadcast %59 : f32 to vector<8x128xf32>
    %426 = arith.mulf %127, %425 : vector<8x128xf32>
    %427 = arith.addf %424, %426 : vector<8x128xf32>
    %428 = vector.broadcast %78 : f32 to vector<8x128xf32>
    %429 = arith.addf %427, %428 : vector<8x128xf32>
    %430 = arith.addf %422, %429 : vector<8x128xf32>
    %cst_21 = arith.constant 0.000000e+00 : f32
    %431 = vector.broadcast %cst_21 : f32 to vector<8x128xf32>
    %432 = arith.maximumf %430, %431 : vector<8x128xf32>
    %433 = vector.broadcast %94 : f32 to vector<8x128xf32>
    %434 = arith.mulf %432, %433 : vector<8x128xf32>
    %435 = arith.addf %393, %434 : vector<8x128xf32>
    %436 = vector.broadcast %110 : f32 to vector<8x128xf32>
    %437 = arith.mulf %432, %436 : vector<8x128xf32>
    %438 = arith.addf %396, %437 : vector<8x128xf32>
    %439 = vector.broadcast %60 : f32 to vector<8x128xf32>
    %440 = arith.mulf %118, %439 : vector<8x128xf32>
    %441 = vector.broadcast %61 : f32 to vector<8x128xf32>
    %442 = arith.mulf %121, %441 : vector<8x128xf32>
    %443 = arith.addf %440, %442 : vector<8x128xf32>
    %444 = vector.broadcast %62 : f32 to vector<8x128xf32>
    %445 = arith.mulf %124, %444 : vector<8x128xf32>
    %446 = vector.broadcast %63 : f32 to vector<8x128xf32>
    %447 = arith.mulf %127, %446 : vector<8x128xf32>
    %448 = arith.addf %445, %447 : vector<8x128xf32>
    %449 = vector.broadcast %79 : f32 to vector<8x128xf32>
    %450 = arith.addf %448, %449 : vector<8x128xf32>
    %451 = arith.addf %443, %450 : vector<8x128xf32>
    %cst_22 = arith.constant 0.000000e+00 : f32
    %452 = vector.broadcast %cst_22 : f32 to vector<8x128xf32>
    %453 = arith.maximumf %451, %452 : vector<8x128xf32>
    %454 = vector.broadcast %95 : f32 to vector<8x128xf32>
    %455 = arith.mulf %453, %454 : vector<8x128xf32>
    %456 = arith.addf %414, %455 : vector<8x128xf32>
    %457 = vector.broadcast %111 : f32 to vector<8x128xf32>
    %458 = arith.mulf %453, %457 : vector<8x128xf32>
    %459 = arith.addf %417, %458 : vector<8x128xf32>
    %460 = arith.addf %435, %456 : vector<8x128xf32>
    %461 = vector.broadcast %112 : f32 to vector<8x128xf32>
    %462 = arith.addf %460, %461 : vector<8x128xf32>
    %cst_23 = arith.constant 5.000000e-01 : f32
    %463 = vector.broadcast %cst_23 : f32 to vector<8x128xf32>
    %464 = arith.mulf %463, %462 : vector<8x128xf32>
    %465 = math.tanh %464 : vector<8x128xf32>
    %cst_24 = arith.constant 5.000000e-01 : f32
    %466 = vector.broadcast %cst_24 : f32 to vector<8x128xf32>
    %467 = arith.mulf %466, %465 : vector<8x128xf32>
    %cst_25 = arith.constant 5.000000e-01 : f32
    %468 = vector.broadcast %cst_25 : f32 to vector<8x128xf32>
    %469 = arith.addf %467, %468 : vector<8x128xf32>
    %c0_26 = arith.constant 0 : index
    %470 = arith.index_cast %115 : i32 to index
    %c0_27 = arith.constant 0 : index
    %471 = vector.load %arg3[%c0_26, %470, %c0_27] : memref<2x8x128xf32, #tpu.memory_space<vmem>>, vector<1x8x128xf32>
    %472 = vector.shape_cast %471 : vector<1x8x128xf32> to vector<8x128xf32>
    %473 = vector.shape_cast %469 : vector<8x128xf32> to vector<1x8x128xf32>
    tpu.vector_store %arg3[%c0_26, %470, %c0_27], %473 {strides = array<i32>} : memref<2x8x128xf32, #tpu.memory_space<vmem>>, vector<1x8x128xf32>,
    %474 = arith.addf %438, %459 : vector<8x128xf32>
    %475 = vector.broadcast %113 : f32 to vector<8x128xf32>
    %476 = arith.addf %474, %475 : vector<8x128xf32>
    %cst_28 = arith.constant 5.000000e-01 : f32
    %477 = vector.broadcast %cst_28 : f32 to vector<8x128xf32>
    %478 = arith.mulf %477, %476 : vector<8x128xf32>
    %479 = math.tanh %478 : vector<8x128xf32>
    %cst_29 = arith.constant 5.000000e-01 : f32
    %480 = vector.broadcast %cst_29 : f32 to vector<8x128xf32>
    %481 = arith.mulf %480, %479 : vector<8x128xf32>
    %cst_30 = arith.constant 5.000000e-01 : f32
    %482 = vector.broadcast %cst_30 : f32 to vector<8x128xf32>
    %483 = arith.addf %481, %482 : vector<8x128xf32>
    %c1_31 = arith.constant 1 : index
    %484 = arith.index_cast %115 : i32 to index
    %c0_32 = arith.constant 0 : index
    %485 = vector.load %arg3[%c1_31, %484, %c0_32] : memref<2x8x128xf32, #tpu.memory_space<vmem>>, vector<1x8x128xf32>
    %486 = vector.shape_cast %485 : vector<1x8x128xf32> to vector<8x128xf32>
    %487 = vector.shape_cast %483 : vector<8x128xf32> to vector<1x8x128xf32>
    tpu.vector_store %arg3[%c1_31, %484, %c0_32], %487 {strides = array<i32>} : memref<2x8x128xf32, #tpu.memory_space<vmem>>, vector<1x8x128xf32>,
    %c1_i32 = arith.constant 1 : i32
    return
  }
  func.func @transform_0(%arg0: i32) -> i32 {
    %c0_i32 = arith.constant 0 : i32
    %c0_i32_0 = arith.constant 0 : i32
    return %c0_i32 : i32
  }
  func.func @transform_1(%arg0: i32) -> (i32, i32, i32) {
    %c0_i32 = arith.constant 0 : i32
    %c0_i32_0 = arith.constant 0 : i32
    %c0_i32_1 = arith.constant 0 : i32
    return %c0_i32, %arg0, %c0_i32_0 : i32, i32, i32
  }
  func.func @transform_2(%arg0: i32) -> (i32, i32, i32) {
    %c0_i32 = arith.constant 0 : i32
    %c0_i32_0 = arith.constant 0 : i32
    %c0_i32_1 = arith.constant 0 : i32
    return %c0_i32, %arg0, %c0_i32_0 : i32, i32, i32
  }
}

</mosaic_0001>

<bundles_post_ra>
// kernel: simple_self_model_forward.1
= control target key start
LH: loop header
LB: loop body
LE: loop exit
PB: predicated region body
PF: predicated region fallthrough
CT: control target
= control target key end

     0   :  { %7 = vsyncpa [#allocation3], 0  ;;  %s1178_s0 = inlined_call_operand.vmem [shape: f32[114], index: 0, kind: input, shape index: {}]   ;;  %s1179_s1 = inlined_call_operand.vmem [shape: f32[4,8,128], index: 1, kind: input, shape index: {}]   ;;  %s1180_s2 = inlined_call_operand.vmem [shape: f32[2,8,128], index: 2, kind: output, shape index: {}]  }
   0x1   :  { %s14_s11 = sshll.u32 %s1178_s0, 4  ;;  %s15_s11 = int_to_ptr.vmem [resolvable:$true] %s14_s11 }
   0x2   :  { %s612_s12 = scalar_lea.vmem %s15_s11, 16  ;;  %p617_p1 = scmp.lt.s32.totalorder %s15_s11, %s15_s11 }
   0x3   :  { %p613_p0 = scmp.ne.s32.totalorder %s15_s11, %s612_s12  ;;  %p618_p2 = scmp.lt.s32.totalorder %s612_s12, %s612_s12 }
   0x5   :  { %p619_p3 = por %p618_p2, %p617_p1 }
   0x7   :  { %p620_p4 = pnand %p619_p3, %p613_p0 }
   0x9   :  { %623 = shalt.err (!%p620_p4)
}
   0xa   :  { %s626_s13 = smov [#allocation2]  }
   0xb   :  { %17 = dma.vmem_to_smem %s15_s11, 16, %s626_s13, [#allocation3]  }
   0xc   :  { %624 = dma.done.wait [#allocation3], 16  }
   0xd   :  { %625 = vsyncadd [#allocation3], 4294967280 }
   0xe   :  { %23 = sfence }
   0xf   :  { %s645_s14 = sld [smem:[#allocation2]]  ;;  %s651_s0 = sld [smem:[#allocation2 + $0x1]]  ;;  %v682_v0 = vld [vmem:[%s1179_s1] sm:$0xff]  ;;  %v687_v1 = vld [vmem:[%s1179_s1 + $0x8] sm:$0xff]  ;;  %v693_v4 = vld [vmem:[%s1179_s1 + $0x10] sm:$0xff] }
  0x10   :  { %s490_s15 = sld [smem:[#allocation2 + $0x10]]  ;;  %s653_s18 = sld [smem:[#allocation2 + $0x11]]  ;;  %v698_v5 = vld [vmem:[%s1179_s1 + $0x18] sm:$0xff] }
  0x11   :  { %s647_s16 = sld [smem:[#allocation2 + $0x20]]  ;;  %s655_s19 = sld [smem:[#allocation2 + $0x21]] }
  0x12   :  { %s649_s17 = sld [smem:[#allocation2 + $0x30]]  ;;  %s657_s20 = sld [smem:[#allocation2 + $0x31]] }
  0x13   :  { %s659_s21 = sld [smem:[#allocation2 + $0x2]]  ;;  %s667_s25 = sld [smem:[#allocation2 + $0x3]] }
  0x14   :  { %s661_s22 = sld [smem:[#allocation2 + $0x12]]  ;;  %s669_s26 = sld [smem:[#allocation2 + $0x13]] }
  0x15   :  { %s663_s23 = sld [smem:[#allocation2 + $0x22]]  ;;  %s671_s27 = sld [smem:[#allocation2 + $0x23]]  ;;  %v148_v2 = vstv %s645_s14  ;;  %v166_v8 = vstv %s651_s0 }
  0x16   :  { %s665_s24 = sld [smem:[#allocation2 + $0x32]]  ;;  %s673_s28 = sld [smem:[#allocation2 + $0x33]]  ;;  %v150_v3 = vstv %s490_s15  ;;  %v168_v9 = vstv %s653_s18  ;;  %v149_v10 = vmul.f32 %v148_v2, %v682_v0  ;;  %v167_v18 = vmul.f32 %v166_v8, %v682_v0 }
  0x17   :  { %s675_s29 = sld [smem:[#allocation2 + $0x4]]  ;;  %v153_v6 = vstv %s647_s16  ;;  %v151_v11 = vmul.f32 %v687_v1, %v150_v3  ;;  %v171_v12 = vstv %s655_s19  ;;  %s712_s13 = sld [smem:[#allocation2 + $0x5]]  ;;  %v169_v19 = vmul.f32 %v687_v1, %v168_v9 }
  0x18   :  { %s677_s30 = sld [smem:[#allocation2 + $0x14]]  ;;  %v155_v7 = vstv %s649_s17  ;;  %v173_v13 = vstv %s657_s20  ;;  %v154_v14 = vmul.f32 %v693_v4, %v153_v6  ;;  %s718_s1 = sld [smem:[#allocation2 + $0x15]]  ;;  %v172_v22 = vmul.f32 %v693_v4, %v171_v12 }
  0x19   :  { %s702_s11 = sld [smem:[#allocation2 + $0x24]]  ;;  %v156_v15 = vmul.f32 %v698_v5, %v155_v7  ;;  %v184_v16 = vstv %s659_s21  ;;  %s720_s14 = sld [smem:[#allocation2 + $0x25]]  ;;  %v174_v23 = vmul.f32 %v698_v5, %v173_v13  ;;  %v204_v24 = vstv %s667_s25 }
  0x1a   :  { %s704_s12 = sld [smem:[#allocation2 + $0x34]]  ;;  %v186_v17 = vstv %s661_s22  ;;  %s726_s15 = sld [smem:[#allocation2 + $0x35]]  ;;  %v206_v25 = vstv %s669_s26  ;;  %v185_v26 = vmul.f32 %v184_v16, %v682_v0  ;;  %v205_v34 = vmul.f32 %v204_v24, %v682_v0 }
  0x1b   :  { %v189_v20 = vstv %s663_s23  ;;  %s728_s16 = sld [smem:[#allocation2 + $0x6]]  ;;  %v187_v27 = vmul.f32 %v687_v1, %v186_v17  ;;  %v209_v28 = vstv %s671_s27  ;;  %s744_s19 = sld [smem:[#allocation2 + $0x7]]  ;;  %v207_v35 = vmul.f32 %v687_v1, %v206_v25 }
  0x1c   :  { %v191_v21 = vstv %s665_s24  ;;  %s734_s17 = sld [smem:[#allocation2 + $0x16]]  ;;  %v211_v29 = vstv %s673_s28  ;;  %v190_v30 = vmul.f32 %v693_v4, %v189_v20  ;;  %s750_s20 = sld [smem:[#allocation2 + $0x17]]  ;;  %v210_v36 = vmul.f32 %v693_v4, %v209_v28 }
  0x1d   :  { %s736_s0 = sld [smem:[#allocation2 + $0x26]]  ;;  %v192_v31 = vmul.f32 %v698_v5, %v191_v21  ;;  %v224_v32 = vstv %s675_s29  ;;  %s752_s21 = sld [smem:[#allocation2 + $0x27]]  ;;  %v212_v37 = vmul.f32 %v698_v5, %v211_v29  ;;  %v768_v40 = vadd.f32 %v151_v11, %v149_v10 }
  0x1e   :  { %s742_s18 = sld [smem:[#allocation2 + $0x36]]  ;;  %v226_v33 = vstv %s677_s30  ;;  %s756_s22 = sld [smem:[#allocation2 + $0x37]]  ;;  %v770_v41 = vadd.f32 %v156_v15, %v154_v14  ;;  %v225_v42 = vmul.f32 %v224_v32, %v682_v0  ;;  %v778_v44 = vadd.f32 %v169_v19, %v167_v18 }
  0x1f   :  { %s758_s23 = sld [smem:[#allocation2 + $0x8]]  ;;  %v229_v38 = vstv %s702_s11  ;;  %v227_v43 = vmul.f32 %v687_v1, %v226_v33  ;;  %s776_s27 = sld [smem:[#allocation2 + $0x9]]  ;;  %v780_v45 = vadd.f32 %v174_v23, %v172_v22  ;;  %v782_v46 = vadd.f32 %v187_v27, %v185_v26 }
  0x20   :  { %v231_v39 = vstv %s704_s12  ;;  %s764_s24 = sld [smem:[#allocation2 + $0x18]]  ;;  %v784_v47 = vadd.f32 %v192_v31, %v190_v30  ;;  %s786_s28 = sld [smem:[#allocation2 + $0x19]]  ;;  %v230_v48 = vmul.f32 %v693_v4, %v229_v38  ;;  %v244_v50 = vstv %s712_s13 }
  0x21   :  { %s766_s25 = sld [smem:[#allocation2 + $0x28]]  ;;  %s788_s29 = sld [smem:[#allocation2 + $0x29]]  ;;  %v232_v49 = vmul.f32 %v698_v5, %v231_v39  ;;  %v246_v51 = vstv %s718_s1  ;;  %v798_v52 = vadd.f32 %v207_v35, %v205_v34  ;;  %v800_v53 = vadd.f32 %v212_v37, %v210_v36 }
  0x22   :  { %s774_s26 = sld [smem:[#allocation2 + $0x38]]  ;;  %s794_s30 = sld [smem:[#allocation2 + $0x39]]  ;;  %v249_v54 = vstv %s720_s14  ;;  %v251_v55 = vstv %s726_s15  ;;  %v806_v56 = vadd.f32 %v227_v43, %v225_v42  ;;  %v264_v57 = vstv %s728_s16 }
  0x23   :  { %s796_s3 = sld [smem:[#allocation2 + $0xa]]  ;;  %v266_v58 = vstv %s734_s17  ;;  %v269_v59 = vstv %s736_s0  ;;  %v245_v60 = vmul.f32 %v244_v50, %v682_v0  ;;  %v247_v61 = vmul.f32 %v687_v1, %v246_v51  ;;  %s824_s7 = sld [smem:[#allocation2 + $0xb]] }
  0x24   :  { %s804_s4 = sld [smem:[#allocation2 + $0x1a]]  ;;  %v271_v62 = vstv %s742_s18  ;;  %v284_v63 = vstv %s744_s19  ;;  %v817_v2 = vadd.f32 %v232_v49, %v230_v48  ;;  %v250_v3 = vmul.f32 %v693_v4, %v249_v54  ;;  %s838_s8 = sld [smem:[#allocation2 + $0x1b]] }
  0x25   :  { %s815_s5 = sld [smem:[#allocation2 + $0x2a]]  ;;  %v252_v6 = vmul.f32 %v698_v5, %v251_v55  ;;  %v286_v7 = vstv %s750_s20  ;;  %v265_v8 = vmul.f32 %v264_v57, %v682_v0  ;;  %v267_v9 = vmul.f32 %v687_v1, %v266_v58  ;;  %s844_s9 = sld [smem:[#allocation2 + $0x2b]] }
  0x26   :  { %s822_s6 = sld [smem:[#allocation2 + $0x3a]]  ;;  %v270_v10 = vmul.f32 %v693_v4, %v269_v59  ;;  %v289_v11 = vstv %s752_s21  ;;  %v272_v12 = vmul.f32 %v698_v5, %v271_v62  ;;  %v285_v13 = vmul.f32 %v284_v63, %v682_v0  ;;  %s846_s10 = sld [smem:[#allocation2 + $0x3b]] }
  0x27   :  { %v291_v14 = vstv %s756_s22  ;;  %v304_v15 = vstv %s758_s23  ;;  %v287_v16 = vmul.f32 %v687_v1, %v286_v7  ;;  %v306_v17 = vstv %s764_s24  ;;  %s856_s11 = sld [smem:[#allocation2 + $0x40]]  ;;  %s858_s12 = sld [smem:[#allocation2 + $0x41]] }
  0x28   :  { %v309_v18 = vstv %s766_s25  ;;  %v311_v19 = vstv %s774_s26  ;;  %v290_v20 = vmul.f32 %v693_v4, %v289_v11  ;;  %v324_v21 = vstv %s776_s27  ;;  %s864_s13 = sld [smem:[#allocation2 + $0x42]]  ;;  %s866_s1 = sld [smem:[#allocation2 + $0x43]] }
  0x29   :  { %v326_v22 = vstv %s786_s28  ;;  %v329_v23 = vstv %s788_s29  ;;  %v292_v24 = vmul.f32 %v698_v5, %v291_v14  ;;  %v305_v25 = vmul.f32 %v304_v15, %v682_v0  ;;  %s871_s14 = sld [smem:[#allocation2 + $0x44]]  ;;  %s873_s15 = sld [smem:[#allocation2 + $0x45]] }
  0x2a   :  { %v331_v26 = vstv %s794_s30  ;;  %v344_v27 = vstv %s796_s3  ;;  %v307_v28 = vmul.f32 %v687_v1, %v306_v17  ;;  %v310_v29 = vmul.f32 %v693_v4, %v309_v18  ;;  %s879_s16 = sld [smem:[#allocation2 + $0x46]]  ;;  %s881_s17 = sld [smem:[#allocation2 + $0x47]] }
  0x2b   :  { %v312_v30 = vmul.f32 %v698_v5, %v311_v19  ;;  %v346_v31 = vstv %s804_s4  ;;  %v325_v32 = vmul.f32 %v324_v21, %v682_v0  ;;  %v327_v33 = vmul.f32 %v687_v1, %v326_v22  ;;  %s896_s0 = sld [smem:[#allocation2 + $0xc]]  ;;  %s917_s21 = sld [smem:[#allocation2 + $0x48]] }
  0x2c   :  { %v330_v34 = vmul.f32 %v693_v4, %v329_v23  ;;  %v332_v35 = vmul.f32 %v698_v5, %v331_v26  ;;  %v248_v36 = vadd.f32 %v247_v61, %v245_v60  ;;  %v345_v37 = vmul.f32 %v344_v27, %v682_v0  ;;  %s898_s18 = sld [smem:[#allocation2 + $0x1c]]  ;;  %s919_s22 = sld [smem:[#allocation2 + $0x49]] }
  0x2d   :  { %v347_v38 = vmul.f32 %v687_v1, %v346_v31  ;;  %v349_v39 = vstv %s815_s5  ;;  %v253_v42 = vadd.f32 %v252_v6, %v250_v3  ;;  %v875_v43 = vadd.f32 %v267_v9, %v265_v8  ;;  %s909_s19 = sld [smem:[#allocation2 + $0x2c]]  ;;  %s925_s23 = sld [smem:[#allocation2 + $0x50]] }
  0x2e   :  { %v351_v48 = vstv %s822_s6  ;;  %v364_v49 = vstv %s824_s7  ;;  %v273_v50 = vadd.f32 %v272_v12, %v270_v10  ;;  %v883_v51 = vadd.f32 %v287_v16, %v285_v13  ;;  %s911_s20 = sld [smem:[#allocation2 + $0x3c]]  ;;  %s927_s24 = sld [smem:[#allocation2 + $0x52]] }
  0x2f   :  { %v293_v54 = vadd.f32 %v292_v24, %v290_v20  ;;  %v885_v55 = vadd.f32 %v307_v28, %v305_v25  ;;  %v887_v57 = vadd.f32 %v312_v30, %v310_v29  ;;  %v889_v58 = vadd.f32 %v327_v33, %v325_v32  ;;  %s933_s25 = sld [smem:[#allocation2 + $0x54]]  ;;  %s935_s26 = sld [smem:[#allocation2 + $0x56]] }
  0x30   :  { %v891_v59 = vadd.f32 %v332_v35, %v330_v34  ;;  %v894_v60 = vmul.f32 %v693_v4, %v349_v39  ;;  %v900_v61 = vadd.f32 %v347_v38, %v345_v37  ;;  %v903_v62 = vmul.f32 %v698_v5, %v351_v48  ;;  %s944_s27 = sld [smem:[#allocation2 + $0x58]]  ;;  %s946_s28 = sld [smem:[#allocation2 + $0x5a]] }
  0x31   :  { %v906_v63 = vmul.f32 %v364_v49, %v682_v0  ;;  %v366_v3 = vstv %s838_s8  ;;  %v158_v6 = vstv %s856_s11  ;;  %v176_v7 = vstv %s858_s12  ;;  %s965_s29 = sld [smem:[#allocation2 + $0x5c]]  ;;  %s975_s30 = sld [smem:[#allocation2 + $0x4a]] }
  0x32   :  { %v369_v8 = vstv %s844_s9  ;;  %v371_v9 = vstv %s846_s10  ;;  %v159_v10 = vadd.f32 %v158_v6, %v770_v41  ;;  %v177_v11 = vadd.f32 %v176_v7, %v780_v45  ;;  %s977_s3 = sld [smem:[#allocation2 + $0x5e]]  ;;  %s983_s4 = sld [smem:[#allocation2 + $0x51]] }
  0x33   :  { %v194_v12 = vstv %s864_s13  ;;  %v214_v13 = vstv %s866_s1  ;;  %v234_v16 = vstv %s871_s14  ;;  %v254_v17 = vstv %s873_s15  ;;  %s985_s5 = sld [smem:[#allocation2 + $0x53]]  ;;  %s993_s6 = sld [smem:[#allocation2 + $0x55]] }
  0x34   :  { %v195_v14 = vadd.f32 %v194_v12, %v784_v47  ;;  %v215_v15 = vadd.f32 %v214_v13, %v800_v53  ;;  %v938_v41 = vadd.f32 %v159_v10, %v768_v40  ;;  %v941_v45 = vadd.f32 %v177_v11, %v778_v44  ;;  %s995_s7 = sld [smem:[#allocation2 + $0x57]]  ;;  %s999_s8 = sld [smem:[#allocation2 + $0x59]] }
  0x35   :  { %v235_v18 = vadd.f32 %v234_v16, %v817_v2  ;;  %v255_v19 = vadd.f32 %v254_v17, %v253_v42  ;;  %v274_v40 = vstv %s879_s16  ;;  %v294_v20 = vstv %s881_s17  ;;  %s1001_s9 = sld [smem:[#allocation2 + $0x5b]]  ;;  %s1008_s10 = sld [smem:[#allocation2 + $0x5d]] }
  0x36   :  { %v949_v47 = vadd.f32 %v195_v14, %v782_v46  ;;  %v952_v53 = vadd.f32 %v215_v15, %v798_v52  ;;  %v367_v21 = vmul.f32 %v687_v1, %v366_v3  ;;  %v370_v22 = vmul.f32 %v693_v4, %v369_v8  ;;  %s1010_s11 = sld [smem:[#allocation2 + $0x5f]]  ;;  %s1027_s12 = sld [smem:[#allocation2 + $0x60]] }
  0x37   :  { %v957_v44 = vadd.f32 %v235_v18, %v806_v56  ;;  %v959_v2 = vadd.f32 %v255_v19, %v248_v36  ;;  %v161_v46 = vmax.f32 %v938_v41, 0.0  ;;  %v179_v52 = vmax.f32 %v941_v45, 0.0  ;;  %s1029_s13 = sld [smem:[#allocation2 + $0x62]]  ;;  %s1041_s1 = sld [smem:[#allocation2 + $0x61]] }
  0x38   :  { %v275_v23 = vadd.f32 %v274_v40, %v273_v50  ;;  %v295_v24 = vadd.f32 %v294_v20, %v293_v54  ;;  %v197_v56 = vmax.f32 %v949_v47, 0.0  ;;  %v217_v25 = vmax.f32 %v952_v53, 0.0  ;;  %s1043_s14 = sld [smem:[#allocation2 + $0x63]]  ;;  %s1049_s16 = sld [smem:[#allocation2 + $0x4c]] }
  0x39   :  { %v372_v26 = vmul.f32 %v698_v5, %v371_v9  ;;  %v384_v27 = vstv %s896_s0  ;;  %v162_v28 = vstv %s925_s23  ;;  %v180_v29 = vstv %s927_s24  ;;  %s1047_s15 = sld [smem:[#allocation2 + $0x4b]]  ;;  %s1053_s17 = sld [smem:[#allocation2 + $0x64]] }
  0x3a   :  { %v237_v30 = vmax.f32 %v957_v44, 0.0  ;;  %v257_v31 = vmax.f32 %v959_v2, 0.0  ;;  %v198_v32 = vstv %s933_s25  ;;  %v218_v33 = vstv %s935_s26  ;;  %s1055_s0 = sld [smem:[#allocation2 + $0x65]]  ;;  %s1082_s23 = sld [smem:[#allocation2 + $0xe]] }
  0x3b   :  { %v314_v34 = vstv %s917_s21  ;;  %v334_v35 = vstv %s919_s22  ;;  %v163_v36 = vmul.f32 %v162_v28, %v161_v46  ;;  %v181_v37 = vmul.f32 %v180_v29, %v179_v52  ;;  %s1074_s21 = sld [smem:[#allocation2 + $0x66]]  ;;  %s1080_s22 = sld [smem:[#allocation2 + $0x3d]] }
  0x3c   :  { %v988_v38 = vadd.f32 %v275_v23, %v875_v43  ;;  %v991_v39 = vadd.f32 %v295_v24, %v883_v51  ;;  %v199_v42 = vmul.f32 %v198_v32, %v197_v56  ;;  %v219_v48 = vmul.f32 %v218_v33, %v217_v25  ;;  %s1084_s24 = sld [smem:[#allocation2 + $0x67]]  ;;  %s1089_s25 = sld [smem:[#allocation2 + $0x1e]] }
  0x3d   :  { %v238_v49 = vstv %s944_s27  ;;  %v258_v50 = vstv %s946_s28  ;;  %v353_v54 = vadd.f32 %v903_v62, %v894_v60  ;;  %v386_v43 = vstv %s898_s18  ;;  %s1064_s18 = sld [smem:[#allocation2 + $0xd]]  ;;  %s1094_s27 = sld [smem:[#allocation2 + $0x2e]] }
  0x3e   :  { %v389_v3 = vstv %s909_s19  ;;  %v391_v51 = vstv %s911_s20  ;;  %v315_v6 = vadd.f32 %v314_v34, %v887_v57  ;;  %v335_v7 = vadd.f32 %v334_v35, %v891_v59  ;;  %s1066_s19 = sld [smem:[#allocation2 + $0x1d]]  ;;  %s1099_s28 = sld [smem:[#allocation2 + $0x3e]] }
  0x3f   :  { %v1015_v8 = vadd.f32 %v367_v21, %v906_v63  ;;  %v1017_v9 = vadd.f32 %v372_v26, %v370_v22  ;;  %v239_v60 = vmul.f32 %v238_v49, %v237_v30  ;;  %v259_v62 = vmul.f32 %v258_v50, %v257_v31  ;;  %s1072_s20 = sld [smem:[#allocation2 + $0x2d]] }
  0x40   :  { %v277_v10 = vmax.f32 %v988_v38, 0.0  ;;  %v1025_v11 = vmul.f32 %v384_v27, %v682_v0  ;;  %v200_v57 = vadd.f32 %v199_v42, %v163_v36  ;;  %v220_v59 = vadd.f32 %v219_v48, %v181_v37  ;;  %s1091_s26 = sld [smem:[#allocation2 + $0x4d]] }
  0x41   :  { %v278_v63 = vstv %s965_s29  ;;  %v297_v12 = vmax.f32 %v991_v39, 0.0  ;;  %v164_v13 = vstv %s983_s4  ;;  %v182_v14 = vstv %s985_s5  ;;  %s1101_s29 = sld [smem:[#allocation2 + $0x68]]  ;;  %s1110_s4 = sld [smem:[#allocation2 + $0x4e]] }
  0x42   :  { %v1036_v15 = vadd.f32 %v315_v6, %v885_v55  ;;  %v1039_v16 = vadd.f32 %v335_v7, %v889_v58  ;;  %v165_v17 = vmul.f32 %v164_v13, %v161_v46  ;;  %v183_v41 = vmul.f32 %v182_v14, %v179_v52  ;;  %s1115_s5 = sld [smem:[#allocation2 + $0x1f]] }
  0x43   :  { %v201_v45 = vstv %s993_s6  ;;  %v221_v18 = vstv %s995_s7  ;;  %v241_v47 = vstv %s999_s8  ;;  %v261_v58 = vstv %s1001_s9  ;;  %s1117_s6 = sld [smem:[#allocation2 + $0x2f]]  ;;  %s1135_s9 = sld [smem:[#allocation2 + $0x6a]] }
  0x44   :  { %v202_v19 = vmul.f32 %v201_v45, %v197_v56  ;;  %v222_v55 = vmul.f32 %v221_v18, %v217_v25  ;;  %v279_v53 = vmul.f32 %v278_v63, %v277_v10  ;;  %v298_v40 = vstv %s977_s3  ;;  %s1108_s3 = sld [smem:[#allocation2 + $0xf]] }
  0x45   :  { %v354_v20 = vstv %s975_s30  ;;  %v387_v21 = vmul.f32 %v687_v1, %v386_v43  ;;  %v242_v52 = vmul.f32 %v241_v47, %v237_v30  ;;  %v262_v23 = vmul.f32 %v261_v58, %v257_v31  ;;  %s1103_s30 = sld [smem:[#allocation2 + $0x69]]  ;;  %s1125_s7 = sld [smem:[#allocation2 + $0x3f]] }
  0x46   :  { %v203_v22 = vadd.f32 %v202_v19, %v165_v17  ;;  %v223_v46 = vadd.f32 %v222_v55, %v183_v41  ;;  %v240_v24 = vadd.f32 %v239_v60, %v200_v57  ;;  %v260_v56 = vadd.f32 %v259_v62, %v220_v59  ;;  %s1130_s8 = sld [smem:[#allocation2 + $0x4f]] }
  0x47   :  { %v281_v25 = vstv %s1008_s10  ;;  %v301_v26 = vstv %s1010_s11  ;;  %v299_v27 = vmul.f32 %v298_v40, %v297_v12  ;;  %v317_v28 = vmax.f32 %v1036_v15, 0.0  ;;  %s1137_s10 = sld [smem:[#allocation2 + $0x6b]]  ;;  %s1144_s11 = sld [smem:[#allocation2 + $0x6c]] }
  0x48   :  { %v337_v29 = vmax.f32 %v1039_v16, 0.0  ;;  %v355_v44 = vadd.f32 %v354_v20, %v353_v54  ;;  %v318_v2 = vstv %s1027_s12  ;;  %v338_v30 = vstv %s1029_s13  ;;  %s1146_s12 = sld [smem:[#allocation2 + $0x6d]]  ;;  %s1158_s13 = sld [smem:[#allocation2 + $0x6e]] }
  0x49   :  { %v390_v31 = vmul.f32 %v693_v4, %v389_v3  ;;  %v392_v32 = vmul.f32 %v698_v5, %v391_v51  ;;  %v243_v33 = vadd.f32 %v242_v52, %v203_v22  ;;  %v263_v34 = vadd.f32 %v262_v23, %v223_v46 }
  0x4a   :  { %v282_v35 = vmul.f32 %v281_v25, %v277_v10  ;;  %v302_v36 = vmul.f32 %v301_v26, %v297_v12  ;;  %v280_v37 = vadd.f32 %v279_v53, %v240_v24  ;;  %v321_v38 = vstv %s1041_s1  ;;  %s1160_s1 = sld [smem:[#allocation2 + $0x6f]] }
  0x4b   :  { %v341_v39 = vstv %s1043_s14  ;;  %v356_v42 = vadd.f32 %v355_v44, %v900_v61  ;;  %v300_v48 = vadd.f32 %v299_v27, %v260_v56  ;;  %v319_v49 = vmul.f32 %v318_v2, %v317_v28  ;;  %s601_s14 = sld [smem:[#allocation2 + $0x70]] }
  0x4c   :  { %v339_v50 = vmul.f32 %v338_v30, %v337_v29  ;;  %v374_v54 = vstv %s1047_s15  ;;  %v358_v43 = vstv %s1053_s17  ;;  %v361_v3 = vstv %s1055_s0  ;;  %s602_s15 = sld [smem:[#allocation2 + $0x71]] }
  0x4d   :  { %v393_v51 = vadd.f32 %v392_v32, %v390_v31  ;;  %v394_v6 = vstv %s1049_s16  ;;  %v283_v61 = vadd.f32 %v282_v35, %v243_v33  ;;  %v303_v7 = vadd.f32 %v302_v36, %v263_v34 }
  0x4e   :  { %v322_v60 = vmul.f32 %v321_v38, %v317_v28  ;;  %v342_v62 = vmul.f32 %v341_v39, %v337_v29  ;;  %v357_v10 = vmax.f32 %v356_v42, 0.0  ;;  %v375_v57 = vadd.f32 %v374_v54, %v1017_v9 }
  0x4f   :  { %v404_v59 = vstv %s1064_s18  ;;  %v406_v63 = vstv %s1066_s19  ;;  %v320_v12 = vadd.f32 %v319_v49, %v280_v37  ;;  %v1112_v13 = vadd.f32 %v339_v50, %v300_v48 }
  0x50   :  { %v388_v14 = vadd.f32 %v387_v21, %v1025_v11  ;;  %v395_v15 = vadd.f32 %v394_v6, %v393_v51  ;;  %v378_v9 = vstv %s1074_s21  ;;  %v405_v16 = vmul.f32 %v404_v59, %v682_v0 }
  0x51   :  { %v407_v17 = vmul.f32 %v687_v1, %v406_v63  ;;  %v409_v41 = vstv %s1072_s20  ;;  %v323_v45 = vadd.f32 %v322_v60, %v283_v61  ;;  %v343_v18 = vadd.f32 %v342_v62, %v303_v7 }
  0x52   :  { %v410_v19 = vmul.f32 %v693_v4, %v409_v41  ;;  %v411_v55 = vstv %s1080_s22  ;;  %v359_v11 = vmul.f32 %v358_v43, %v357_v10  ;;  %v376_v47 = vadd.f32 %v375_v57, %v1015_v8 }
  0x53   :  { %v381_v58 = vstv %s1084_s24  ;;  %v412_v53 = vmul.f32 %v698_v5, %v411_v55  ;;  %v396_v40 = vadd.f32 %v395_v15, %v388_v14  ;;  %v414_v20 = vstv %s1091_s26 }
  0x54   :  { %v424_v21 = vstv %s1082_s23  ;;  %v426_v22 = vstv %s1089_s25  ;;  %v362_v46 = vmul.f32 %v361_v3, %v357_v10  ;;  %v408_v52 = vadd.f32 %v407_v17, %v405_v16 }
  0x55   :  { %v413_v8 = vadd.f32 %v412_v53, %v410_v19  ;;  %v425_v23 = vmul.f32 %v424_v21, %v682_v0  ;;  %v398_v24 = vstv %s1101_s29  ;;  %v427_v56 = vmul.f32 %v687_v1, %v426_v22 }
  0x56   :  { %v429_v25 = vstv %s1094_s27  ;;  %v431_v26 = vstv %s1099_s28  ;;  %v377_v27 = vmax.f32 %v376_v47, 0.0  ;;  %v401_v28 = vstv %s1103_s30 }
  0x57   :  { %v415_v29 = vadd.f32 %v414_v20, %v413_v8  ;;  %v430_v44 = vmul.f32 %v693_v4, %v429_v25  ;;  %v397_v2 = vmax.f32 %v396_v40, 0.0  ;;  %v428_v30 = vadd.f32 %v427_v56, %v425_v23 }
  0x58   :  { %v432_v31 = vmul.f32 %v698_v5, %v431_v26  ;;  %v434_v32 = vstv %s1110_s4  ;;  %v444_v34 = vstv %s1108_s3  ;;  %v446_v35 = vstv %s1115_s5 }
  0x59   :  { %v416_v33 = vadd.f32 %v415_v29, %v408_v52  ;;  %v449_v36 = vstv %s1117_s6  ;;  %v445_v38 = vmul.f32 %v444_v34, %v682_v0  ;;  %v447_v39 = vmul.f32 %v687_v1, %v446_v35 }
  0x5a   :  { %v433_v37 = vadd.f32 %v432_v31, %v430_v44  ;;  %v450_v42 = vmul.f32 %v693_v4, %v449_v36  ;;  %v360_v48 = vadd.f32 %v359_v11, %v320_v12  ;;  %v379_v49 = vmul.f32 %v378_v9, %v377_v27 }
  0x5b   :  { %v382_v50 = vmul.f32 %v381_v58, %v377_v27  ;;  %v451_v54 = vstv %s1125_s7  ;;  %v363_v43 = vadd.f32 %v362_v46, %v323_v45  ;;  %v417_v3 = vmax.f32 %v416_v33, 0.0 }
  0x5c   :  { %v435_v51 = vadd.f32 %v434_v32, %v433_v37  ;;  %v452_v0 = vmul.f32 %v698_v5, %v451_v54  ;;  %v399_v6 = vmul.f32 %v398_v24, %v397_v2  ;;  %v418_v61 = vstv %s1135_s9 }
  0x5d   :  { %v421_v1 = vstv %s1137_s10  ;;  %v454_v7 = vstv %s1130_s8  ;;  %v402_v4 = vmul.f32 %v401_v28, %v397_v2  ;;  %v448_v62 = vadd.f32 %v447_v39, %v445_v38 }
  0x5e   :  { %v436_v60 = vadd.f32 %v435_v51, %v428_v30  ;;  %v453_v10 = vadd.f32 %v452_v0, %v450_v42  ;;  %v380_v57 = vadd.f32 %v379_v49, %v1112_v13  ;;  %v383_v59 = vadd.f32 %v382_v50, %v343_v18 }
  0x5f   :  { %v438_v63 = vstv %s1144_s11  ;;  %v441_v12 = vstv %s1146_s12  ;;  %v419_v14 = vmul.f32 %v418_v61, %v417_v3  ;;  %v422_v15 = vmul.f32 %v421_v1, %v417_v3 }
  0x60   :  { %v437_v9 = vmax.f32 %v436_v60, 0.0  ;;  %v455_v16 = vadd.f32 %v454_v7, %v453_v10  ;;  %v400_v5 = vadd.f32 %v399_v6, %v360_v48  ;;  %v403_v17 = vadd.f32 %v402_v4, %v363_v43 }
  0x61   :  { %v458_v55 = vstv %s1158_s13  ;;  %v461_v11 = vstv %s1160_s1  ;;  %v420_v47 = vadd.f32 %v419_v14, %v380_v57  ;;  %v423_v58 = vadd.f32 %v422_v15, %v383_v59 }
  0x62   :  { %v439_v41 = vmul.f32 %v438_v63, %v437_v9  ;;  %v442_v45 = vmul.f32 %v441_v12, %v437_v9  ;;  %v456_v19 = vadd.f32 %v455_v16, %v448_v62  ;;  %v465_v46 = vstv %s601_s14 }
  0x63   :  { %v473_v52 = vstv %s602_s15 }
  0x64   :  { %v457_v13 = vmax.f32 %v456_v19, 0.0  ;;  %v440_v53 = vadd.f32 %v439_v41, %v400_v5  ;;  %v443_v18 = vadd.f32 %v442_v45, %v403_v17 }
  0x66   :  { %v459_v40 = vmul.f32 %v458_v55, %v457_v13  ;;  %v462_v20 = vmul.f32 %v461_v11, %v457_v13 }
  0x68   :  { %v460_v21 = vadd.f32 %v459_v40, %v420_v47  ;;  %v463_v22 = vadd.f32 %v462_v20, %v423_v58 }
  0x6a   :  { %v464_v8 = vadd.f32 %v460_v21, %v440_v53  ;;  %v472_v23 = vadd.f32 %v463_v22, %v443_v18 }
  0x6c   :  { %v466_v24 = vadd.f32 %v465_v46, %v464_v8  ;;  %v474_v56 = vadd.f32 %v473_v52, %v472_v23 }
  0x6e   :  { %v467_v25 = vmul.f32 0.5, %v466_v24  ;;  %v475_v26 = vmul.f32 0.5, %v474_v56 }
  0x70   :  { %608 = vtanh.f32 %v467_v25 }
  0x71   :  { %610 = vtanh.f32 %v475_v26 }
  0x7a   :  { %v609_v27 = vpop.eup %608 }
  0x7b   :  { %v611_v28 = vpop.eup %610  ;;  %v469_v29 = vmul.f32 0.5, %v609_v27 }
  0x7c   :  { %v477_v44 = vmul.f32 0.5, %v611_v28 }
  0x7d   :  { %v470_v2 = vadd.f32 0.5, %v469_v29 }
  0x7e   :  { %v478_v30 = vadd.f32 0.5, %v477_v44 }
  0x7f   :  { %471 = vst [vmem:[%s1180_s2] sm:$0xff] %v470_v2 }
  0x80   :  { %606 = vst [vmem:[%s1180_s2 + $0x8] sm:$0xff] %v478_v30 }
  0x81   :  { %485 = vsyncpa [#allocation3], 1 }

</bundles_post_ra>
